<compile_context>
chip_gen: v5e
topology: v5e:2x2
jax: 0.10.0
libtpu: 0.0.40
codegen_flags: <defaults>
</compile_context>

<pallas_src>
import math

import jax
import jax.numpy as jnp
from jax.experimental import pallas as pl
from jax.experimental.pallas import tpu as pltpu


def _sum_kernel(*refs):
    """Variadic elementwise-sum kernel.

    refs = (in_ref_0, ..., in_ref_{k-1}, out_ref); every ref is a
    (tile_rows, lane) VMEM tile of the flattened feature map.
    """
    *in_refs, o_ref = refs
    acc = in_refs[0][...]
    for r in in_refs[1:]:
        acc = acc + r[...]
    o_ref[...] = acc.astype(o_ref.dtype)


def _choose_tiling(total, itemsize, n_arrays):
    """Pick (lane, rows, tile_rows) for a flat elementwise op of `total` elements.

    lane:       largest power-of-two multiple of 128 dividing `total`, capped at 2048
                (lane-dense -> unmasked vector stores, wide DMA).
    tile_rows:  multiple of 8 that divides rows, sized so that
                2 buffers x n_arrays x tile_bytes stays well inside scoped VMEM on
                every generation (v5e/v6e/v7x), while keeping >=4 grid steps when
                possible so v7x's two TensorCores both stream.
    """
    lane = 128
    while lane * 2 <= 2048 and total % (lane * 2) == 0:
        lane *= 2
    rows = total // lane

    if rows < 8:
        # Tiny problem: single full block (block shape == full array shape is legal).
        return lane, rows, rows

    # ~24 MiB total live VMEM budget across double-buffered inputs + output.
    per_tile_budget = (24 * 1024 * 1024) // (2 * n_arrays)
    budget_rows = max(8, per_tile_budget // (lane * itemsize))
    cap = int(min(budget_rows, max(8, rows // 4)))  # prefer >=4 grid steps

    tile_rows = rows  # fallback: one full block (always a legal block shape)
    best = None
    for cand in range(8, cap + 1, 8):
        if rows % cand == 0:
            best = cand
    if best is not None:
        tile_rows = best
    return lane, rows, tile_rows


def _fused_sum(flat_list):
    """Elementwise sum of equally-shaped (N, CD, H, W) arrays with one Pallas kernel."""
    out_dtype = jnp.result_type(*[f.dtype for f in flat_list])
    shape = flat_list[0].shape
    total = math.prod(shape)
    k = len(flat_list)

    if total % 128 != 0:
        # TODO(synk): ragged element count (not a multiple of 128 lanes) — fall back to XLA add.
        out = flat_list[0].astype(out_dtype)
        for f in flat_list[1:]:
            out = out + f
        return out

    itemsize = max(
        [jnp.dtype(f.dtype).itemsize for f in flat_list] + [jnp.dtype(out_dtype).itemsize]
    )
    lane, rows, tile_rows = _choose_tiling(total, itemsize, k + 1)

    # Free, contiguous row-major reinterpretation to a lane-dense 2D slab.
    flat2d = [f.reshape(rows, lane) for f in flat_list]

    spec = pl.BlockSpec((tile_rows, lane), lambda i: (i, 0))
    grid = (rows // tile_rows,)

    bytes_accessed = sum(
        f.size * jnp.dtype(f.dtype).itemsize for f in flat_list
    ) + total * jnp.dtype(out_dtype).itemsize
    cost = pl.CostEstimate(
        flops=(k - 1) * total,
        transcendentals=0,
        bytes_accessed=bytes_accessed,
    )

    out2d = pl.pallas_call(
        _sum_kernel,
        out_shape=jax.ShapeDtypeStruct((rows, lane), out_dtype),
        grid=grid,
        in_specs=[spec] * k,
        out_specs=spec,
        compiler_params=pltpu.CompilerParams(
            dimension_semantics=("parallel",),
            vmem_limit_bytes=48 * 1024 * 1024,
        ),
        cost_estimate=cost,
    )(*flat2d)
    return out2d.reshape(shape)


def height_compression(tensor_list):
    """[reshape(N,C,D,H,W -> N,C*D,H,W)] + sum-over-list.

    Args:
      tensor_list: list of dense jnp arrays of shape (N, Ci, Di, H, W) with identical
        N, H, W and identical Ci*Di (the PyTorch `+` requirement).
    Returns:
      (N, C*D, H, W) array — `spatial_features`.
    """
    flat = []
    for t in tensor_list:
        N, C, D, H, W = t.shape
        flat.append(t.reshape(N, C * D, H, W))

    N, CD, H, W = flat[0].shape
    for f in flat:
        assert f.shape == (N, CD, H, W), "all tensors must reshape to same (N, C*D, H, W)"

    if len(flat) == 1:
        # Pure metadata reshape — don't burn 2x HBM traffic on a copy kernel.
        return flat[0]
    return _fused_sum(flat)


class HeightCompression:
    """JAX/Pallas port of the PyTorch HeightCompression module.

    Sparse spconv tensors are represented here by their already-densified
    (N, C, D, H, W) arrays (equivalent to `.dense()` in the reference code).
    """

    def __init__(self, model_cfg):
        self.model_cfg = model_cfg
        self.num_bev_features = model_cfg["NUM_BEV_FEATURES"]

    def forward(self, batch_dict):
        if ("fusion_feature" not in batch_dict
                and "encoded_spconv_tensorlist" not in batch_dict):
            spatial_features_5d = batch_dict["encoded_spconv_tensor"]  # already dense
            spatial_features = height_compression([spatial_features_5d])
        elif "encoded_spconv_tensorlist" in batch_dict:
            dense_list = batch_dict["encoded_spconv_tensorlist"]       # already dense
            spatial_features = height_compression(dense_list)
            batch_dict["spatial_features"] = spatial_features
            batch_dict["spatial_features_stride"] = batch_dict["encoded_spconv_tensor_stride"]
            return batch_dict
        else:
            spatial_features_5d = batch_dict["fusion_feature"]
            spatial_features = height_compression([spatial_features_5d])

        batch_dict["spatial_features"] = spatial_features
        batch_dict["spatial_features_stride"] = batch_dict["encoded_spconv_tensor_stride"]
        return batch_dict


if __name__ == "__main__":
    # Small deterministic shapes: N=2, C=4, D=2, H=16, W=16  ->  C*D = 8 BEV features.
    N, C, D, H, W = 2, 4, 2, 16, 16
    key = jax.random.PRNGKey(0)
    k0, k1, k2, k3 = jax.random.split(key, 4)

    x = jax.random.normal(k0, (N, C, D, H, W), dtype=jnp.float32)
    y = jax.random.normal(k1, (N, C, D, H, W), dtype=jnp.float32)
    z = jax.random.normal(k2, (N, 2 * C, D // 2, H, W), dtype=jnp.float32)  # same C*D

    model_cfg = {"NUM_BEV_FEATURES": C * D}
    module = HeightCompression(model_cfg)

    # Path 1: single encoded_spconv_tensor (pure reshape, kernel bypassed).
    bd1 = {"encoded_spconv_tensor": x, "encoded_spconv_tensor_stride": 8}
    bd1 = module.forward(bd1)
    sf1 = jax.block_until_ready(bd1["spatial_features"])
    ref1 = x.reshape(N, C * D, H, W)
    assert sf1.shape == (N, C * D, H, W)
    assert jnp.allclose(sf1, ref1, atol=1e-6)
    assert bd1["spatial_features_stride"] == 8

    # Path 2: encoded_spconv_tensorlist (Pallas fused streaming sum).
    bd2 = {"encoded_spconv_tensorlist": [x, y, z], "encoded_spconv_tensor_stride": 8}
    bd2 = module.forward(bd2)
    sf2 = jax.block_until_ready(bd2["spatial_features"])
    ref2 = (x.reshape(N, C * D, H, W)
            + y.reshape(N, C * D, H, W)
            + z.reshape(N, C * D, H, W))
    assert sf2.shape == (N, C * D, H, W)
    assert jnp.allclose(sf2, ref2, atol=1e-5)

    # Path 2b: larger shape so the kernel runs with a multi-step parallel grid.
    N2, C2, D2, H2, W2 = 2, 8, 4, 32, 64
    a = jax.random.normal(k3, (N2, C2, D2, H2, W2), dtype=jnp.float32)
    b = jax.random.normal(k0, (N2, C2, D2, H2, W2), dtype=jnp.float32)
    bd2b = {"encoded_spconv_tensorlist": [a, b], "encoded_spconv_tensor_stride": 4}
    bd2b = module.forward(bd2b)
    sf2b = jax.block_until_ready(bd2b["spatial_features"])
    ref2b = a.reshape(N2, C2 * D2, H2, W2) + b.reshape(N2, C2 * D2, H2, W2)
    assert sf2b.shape == (N2, C2 * D2, H2, W2)
    assert jnp.allclose(sf2b, ref2b, atol=1e-5)

    # Path 3: fusion_feature (pure reshape, kernel bypassed).
    bd3 = {"fusion_feature": y, "encoded_spconv_tensor_stride": 4}
    bd3 = module.forward(bd3)
    sf3 = jax.block_until_ready(bd3["spatial_features"])
    assert jnp.allclose(sf3, y.reshape(N, C * D, H, W), atol=1e-6)

    print("KERNEL_OK")
</pallas_src>

<mosaic_0001>
module attributes {stable_mosaic.version = 11 : i64} {
  func.func @_sum_kernel(%arg0: i32, %arg1: memref<2x2048xf32, #tpu.memory_space<vmem>>, %arg2: memref<2x2048xf32, #tpu.memory_space<vmem>>, %arg3: memref<2x2048xf32, #tpu.memory_space<vmem>>, %arg4: memref<2x2048xf32, #tpu.memory_space<vmem>>) attributes {dimension_semantics = [#tpu.dimension_semantics<parallel>], iteration_bounds = array<i64: 1>, scalar_prefetch = 0 : i64, scratch_operands = 0 : i64, tpu.core_type = #tpu.core_type<tc>, window_params = [{transform_indices = @transform_0, window_bounds = array<i64: 2, 2048>}, {transform_indices = @transform_1, window_bounds = array<i64: 2, 2048>}, {transform_indices = @transform_2, window_bounds = array<i64: 2, 2048>}, {transform_indices = @transform_3, window_bounds = array<i64: 2, 2048>}]} {
    %c0 = arith.constant 0 : index
    %c0_0 = arith.constant 0 : index
    %0 = vector.load %arg1[%c0, %c0_0] : memref<2x2048xf32, #tpu.memory_space<vmem>>, vector<2x2048xf32>
    %c0_1 = arith.constant 0 : index
    %c0_2 = arith.constant 0 : index
    %1 = vector.load %arg2[%c0_1, %c0_2] : memref<2x2048xf32, #tpu.memory_space<vmem>>, vector<2x2048xf32>
    %2 = arith.addf %0, %1 : vector<2x2048xf32>
    %c0_3 = arith.constant 0 : index
    %c0_4 = arith.constant 0 : index
    %3 = vector.load %arg3[%c0_3, %c0_4] : memref<2x2048xf32, #tpu.memory_space<vmem>>, vector<2x2048xf32>
    %4 = arith.addf %2, %3 : vector<2x2048xf32>
    %c0_5 = arith.constant 0 : index
    %c0_6 = arith.constant 0 : index
    %5 = vector.load %arg4[%c0_5, %c0_6] : memref<2x2048xf32, #tpu.memory_space<vmem>>, vector<2x2048xf32>
    tpu.vector_store %arg4[%c0_5, %c0_6], %4 {strides = array<i32>} : memref<2x2048xf32, #tpu.memory_space<vmem>>, vector<2x2048xf32>,
    return
  }
  func.func @transform_0(%arg0: i32) -> (i32, i32) {
    %c0_i32 = arith.constant 0 : i32
    %c0_i32_0 = arith.constant 0 : i32
    return %arg0, %c0_i32 : i32, i32
  }
  func.func @transform_1(%arg0: i32) -> (i32, i32) {
    %c0_i32 = arith.constant 0 : i32
    %c0_i32_0 = arith.constant 0 : i32
    return %arg0, %c0_i32 : i32, i32
  }
  func.func @transform_2(%arg0: i32) -> (i32, i32) {
    %c0_i32 = arith.constant 0 : i32
    %c0_i32_0 = arith.constant 0 : i32
    return %arg0, %c0_i32 : i32, i32
  }
  func.func @transform_3(%arg0: i32) -> (i32, i32) {
    %c0_i32 = arith.constant 0 : i32
    %c0_i32_0 = arith.constant 0 : i32
    return %arg0, %c0_i32 : i32, i32
  }
}

</mosaic_0001>

<bundles_post_ra>
// kernel: tpu_custom_call.1
= control target key start
LH: loop header
LB: loop body
LE: loop exit
PB: predicated region body
PF: predicated region fallthrough
CT: control target
= control target key end

     0   :  { %8 = vsyncpa [#allocation3], 0  ;;  %s240_s0 = inlined_call_operand.hbm [shape: f32[2,2048], index: 0, kind: input, shape index: {}]   ;;  %s241_s1 = inlined_call_operand.hbm [shape: f32[2,2048], index: 1, kind: input, shape index: {}]   ;;  %s242_s2 = inlined_call_operand.hbm [shape: f32[2,2048], index: 2, kind: input, shape index: {}]   ;;  %s243_s3 = inlined_call_operand.hbm [shape: f32[2,2048], index: 3, kind: output, shape index: {}]  }
   0x1   :  { %9 = vsyncpa [#allocation6], 0  ;;  %s27_s14 = sshll.u32 %s241_s1, 4  ;;  %s28_s14 = int_to_ptr.hbm [resolvable:$true] %s27_s14 }
   0x2   :  { %10 = vsyncpa [#allocation4], 0  ;;  %s204_s15 = smov [#allocation5]   ;;  %s16_s19 = sshll.u32 %s240_s0, 4  ;;  %s17_s19 = int_to_ptr.hbm [resolvable:$true] %s16_s19 }
   0x3   :  { %s29_s16 = sshll.u32 %s204_s15, 4  ;;  %s205_s20 = smov [#allocation2]   ;;  %s30_s16 = int_to_ptr.vmem [resolvable:$true] %s29_s16 }
   0x4   :  { %32 = dma.hbm_to_vmem [thread:$0]  %s28_s14, 512, %s30_s16, [#allocation6]  }
   0x5   :  { %s18_s21 = sshll.u32 %s205_s20, 4  ;;  %s38_s24 = sshll.u32 %s242_s2, 4  ;;  %s19_s21 = int_to_ptr.vmem [resolvable:$true] %s18_s21  ;;  %s39_s24 = int_to_ptr.hbm [resolvable:$true] %s38_s24 }
   0x6   :  { %21 = dma.hbm_to_vmem [thread:$0]  %s17_s19, 512, %s19_s21, [#allocation3]  }
   0x7   :  { %s206_s1 = smov [#allocation7]  }
   0x8   :  { %s40_s25 = sshll.u32 %s206_s1, 4  ;;  %s41_s25 = int_to_ptr.vmem [resolvable:$true] %s40_s25 }
   0x9   :  { %43 = dma.hbm_to_vmem [thread:$0]  %s39_s24, 512, %s41_s25, [#allocation6]  }
   0xa   :  { %198 = dma.done.wait [#allocation3], 512  }
   0xb   :  { %199 = vsyncadd [#allocation3], 4294966784 }
   0xc   :  { %200 = dma.done.wait [#allocation6], 1024  }
   0xd   :  { %201 = vsyncadd [#allocation6], 4294966272  ;;  %v56_v0 = vld [vmem:[#allocation2] sm:$0xff]  ;;  %v57_v4 = vld [vmem:[#allocation2 + $0x8] sm:$0xff]  ;;  %s207_s0 = smov [#allocation8]   ;;  %s87_s28 = sshll.u32 %s243_s3, 4  ;;  %s88_s28 = int_to_ptr.hbm [resolvable:$true] %s87_s28 }
   0xe   :  { %v60_v1 = vld [vmem:[#allocation5] sm:$0xff]  ;;  %v61_v5 = vld [vmem:[#allocation5 + $0x8] sm:$0xff]  ;;  %v58_v8 = vld [vmem:[#allocation2 + $0x10] sm:$0xff]  ;;  %s85_s2 = sshll.u32 %s207_s0, 4  ;;  %s86_s2 = int_to_ptr.vmem [resolvable:$true] %s85_s2 }
   0xf   :  { %v68_v2 = vld [vmem:[#allocation7] sm:$0xff]  ;;  %v64_v3 = vadd.f32 %v60_v1, %v56_v0  ;;  %v69_v6 = vld [vmem:[#allocation7 + $0x8] sm:$0xff]  ;;  %v65_v7 = vadd.f32 %v61_v5, %v57_v4  ;;  %v62_v9 = vld [vmem:[#allocation5 + $0x10] sm:$0xff] }
  0x10   :  { %v70_v10 = vld [vmem:[#allocation7 + $0x10] sm:$0xff]  ;;  %v66_v12 = vadd.f32 %v62_v9, %v58_v8  ;;  %v59_v13 = vld [vmem:[#allocation2 + $0x18] sm:$0xff] }
  0x11   :  { %v72_v11 = vadd.f32 %v68_v2, %v64_v3  ;;  %v63_v14 = vld [vmem:[#allocation5 + $0x18] sm:$0xff]  ;;  %v73_v16 = vadd.f32 %v69_v6, %v65_v7 }
  0x12   :  { %v71_v15 = vld [vmem:[#allocation7 + $0x18] sm:$0xff]  ;;  %v67_v17 = vadd.f32 %v63_v14, %v59_v13  ;;  %v74_v18 = vadd.f32 %v70_v10, %v66_v12 }
  0x13   :  { %76 = vst [vmem:[#allocation8] sm:$0xff] %v72_v11 }
  0x14   :  { %77 = vst [vmem:[#allocation8 + $0x8] sm:$0xff] %v73_v16  ;;  %v75_v19 = vadd.f32 %v71_v15, %v67_v17 }
  0x15   :  { %78 = vst [vmem:[#allocation8 + $0x10] sm:$0xff] %v74_v18 }
  0x16   :  { %79 = vst [vmem:[#allocation8 + $0x18] sm:$0xff] %v75_v19 }
  0x17   :  { %90 = dma.vmem_to_hbm [thread:$0]  %s86_s2, 512, %s88_s28, [#allocation4]  }
  0x18   :  { %202 = dma.done.wait [#allocation4], 512  }
  0x19   :  { %203 = vsyncadd [#allocation4], 4294966784 }
  0x1a   :  { %95 = vsyncpa [#allocation3], 1 }
  0x1b   :  { %96 = vsyncpa [#allocation6], 1 }
  0x1c   :  { %97 = vsyncpa [#allocation4], 1 }

</bundles_post_ra>
